<compile_context>
chip_gen: v5e
topology: v5e:2x2
jax: 0.10.0
libtpu: 0.0.40
codegen_flags: <defaults>
</compile_context>

<pallas_src>
import functools

import jax
import jax.numpy as jnp
from jax.experimental import pallas as pl
from jax.experimental.pallas import tpu as pltpu


def _round_up(x, m):
    return (x + m - 1) // m * m


_MM_ROW_TILES = (256, 128, 64, 32, 16, 8)
_EW_ROW_TILES = (1024, 512, 256, 128, 64, 32, 16, 8)


def _pick_row_tile(M, candidates):
    """Pick a row tile that divides M; prefer >=2 blocks so both v7x TCs get work."""
    for t in candidates:
        if M % t == 0 and M // t >= 2:
            return t, M
    for t in candidates:
        if M % t == 0:
            return t, M
    t = candidates[-1]
    return t, _round_up(M, t)


def _pick_col_tile(N):
    if N % 256 == 0 and N // 256 >= 2:
        return 256
    if N % 128 == 0:
        return 128
    return N  # full-dim block (allowed even when not a multiple of 128)


# ---------------------------------------------------------------------------
# Pallas kernels
# ---------------------------------------------------------------------------

def _fused_mm_kernel(relu, has_res, x_ref, w_ref, s_ref, b_ref, *rest):
    """bf16 matmul (f32 acc) with BN scale/bias (+residual) (+ReLU) epilogue."""
    if has_res:
        r_ref, o_ref = rest
    else:
        (o_ref,) = rest
    acc = jnp.dot(x_ref[...], w_ref[...], preferred_element_type=jnp.float32)
    y = acc * s_ref[...] + b_ref[...]
    if has_res:
        y = y + r_ref[...].astype(jnp.float32)
    if relu:
        y = jnp.maximum(y, 0.0)
    o_ref[...] = y.astype(o_ref.dtype)


def _max9_kernel(x_ref, o_ref):
    o_ref[...] = jnp.max(x_ref[...], axis=0)


def _head_kernel(x_ref, w_ref, b_ref, o_ref):
    """Global-avg-pool + fc + softmax in one kernel (f32 softmax math)."""
    x = x_ref[...].astype(jnp.float32)              # (N, HW, C)
    pooled = jnp.mean(x, axis=1)                    # (N, C)
    logits = jnp.dot(pooled.astype(jnp.bfloat16), w_ref[...],
                     preferred_element_type=jnp.float32) + b_ref[...]
    m = jnp.max(logits, axis=1, keepdims=True)
    e = jnp.exp(logits - m)
    denom = jnp.sum(e, axis=1, keepdims=True)
    o_ref[...] = e * pl.reciprocal(denom, approx=True)


# ---------------------------------------------------------------------------
# Layer wrappers
# ---------------------------------------------------------------------------

def fused_matmul_bn(a, w, scale, bias, relu, residual=None):
    """(M, K)bf16 @ (K, N)bf16 -> bf16, with BN(+res)(+ReLU) fused in the epilogue."""
    M, K = a.shape
    K2, Nc = w.shape
    assert K == K2
    tm, Mp = _pick_row_tile(M, _MM_ROW_TILES)
    tn = _pick_col_tile(Nc)

    a = a.astype(jnp.bfloat16)
    if Mp != M:
        a = jnp.pad(a, ((0, Mp - M), (0, 0)))
        if residual is not None:
            residual = jnp.pad(residual, ((0, Mp - M), (0, 0)))

    in_specs = [
        pl.BlockSpec((tm, K), lambda i, j: (i, 0)),
        pl.BlockSpec((K, tn), lambda i, j: (0, j)),
        pl.BlockSpec((1, tn), lambda i, j: (0, j)),
        pl.BlockSpec((1, tn), lambda i, j: (0, j)),
    ]
    args = [a, w, scale, bias]
    if residual is not None:
        in_specs.append(pl.BlockSpec((tm, tn), lambda i, j: (i, j)))
        args.append(residual.astype(jnp.bfloat16))

    out = pl.pallas_call(
        functools.partial(_fused_mm_kernel, relu, residual is not None),
        out_shape=jax.ShapeDtypeStruct((Mp, Nc), jnp.bfloat16),
        grid=(Mp // tm, Nc // tn),
        in_specs=in_specs,
        out_specs=pl.BlockSpec((tm, tn), lambda i, j: (i, j)),
        compiler_params=pltpu.CompilerParams(
            dimension_semantics=("parallel", "parallel")),
    )(*args)
    return out[:M] if Mp != M else out


def conv_bn(x, p, bn, stride=1, pad=0, relu=True, residual=None):
    """Conv + folded BatchNorm (+residual) (+ReLU).  x: NHWC bf16 -> NHWC bf16."""
    kh, kw, cout = p['kh'], p['kw'], p['cout']
    if kh == 1 and kw == 1:
        if stride > 1:
            x = x[:, ::stride, ::stride, :]
        N, H, W, C = x.shape
        Ho, Wo = H, W
        a2d = x.reshape(N * H * W, C)
    else:
        N, H, W, C = x.shape
        Ho = (H + 2 * pad - kh) // stride + 1
        Wo = (W + 2 * pad - kw) // stride + 1
        xp = jnp.pad(x, ((0, 0), (pad, pad), (pad, pad), (0, 0)))
        # TODO(synk): replace the materialized im2col with shifted-window BlockSpecs that
        # read the padded NHWC tensor directly (removes the kh*kw x activation-size glue).
        cols = []
        for dh in range(kh):
            for dw in range(kw):
                cols.append(xp[:, dh:dh + stride * (Ho - 1) + 1:stride,
                               dw:dw + stride * (Wo - 1) + 1:stride, :])
        a2d = jnp.stack(cols, axis=3).reshape(N * Ho * Wo, kh * kw * C)

    r2d = None if residual is None else residual.reshape(N * Ho * Wo, cout)
    y2d = fused_matmul_bn(a2d, p['w'], bn['scale'], bn['bias'],
                          relu=relu, residual=r2d)
    return y2d.reshape(N, Ho, Wo, cout)


def maxpool_3x3_s2_p1(x):
    N, H, W, C = x.shape
    Ho = (H + 2 - 3) // 2 + 1
    Wo = (W + 2 - 3) // 2 + 1
    xp = jnp.pad(x, ((0, 0), (1, 1), (1, 1), (0, 0)), constant_values=-jnp.inf)
    # TODO(synk): read the padded NHWC tensor directly (shifted windows) instead of
    # materializing the 9-tap stack.
    cols = []
    for dh in range(3):
        for dw in range(3):
            cols.append(xp[:, dh:dh + 2 * (Ho - 1) + 1:2,
                           dw:dw + 2 * (Wo - 1) + 1:2, :])
    M = N * Ho * Wo
    stacked = jnp.stack(cols, axis=0).reshape(9, M, C)
    tm, Mp = _pick_row_tile(M, _EW_ROW_TILES)
    if Mp != M:
        stacked = jnp.pad(stacked, ((0, 0), (0, Mp - M), (0, 0)),
                          constant_values=-jnp.inf)
    out = pl.pallas_call(
        _max9_kernel,
        out_shape=jax.ShapeDtypeStruct((Mp, C), x.dtype),
        grid=(Mp // tm,),
        in_specs=[pl.BlockSpec((9, tm, C), lambda i: (0, i, 0))],
        out_specs=pl.BlockSpec((tm, C), lambda i: (i, 0)),
        compiler_params=pltpu.CompilerParams(dimension_semantics=("parallel",)),
    )(stacked)
    return out[:M].reshape(N, Ho, Wo, C)


def head_gap_fc_softmax(x, w_p, b_p, num_classes):
    """x: NHWC bf16 -> (N, num_classes) softmax probabilities (f32)."""
    N, H, W, C = x.shape
    x3 = x.reshape(N, H * W, C)
    Np = w_p.shape[1]
    out = pl.pallas_call(
        _head_kernel,
        out_shape=jax.ShapeDtypeStruct((N, Np), jnp.float32),
    )(x3, w_p, b_p)
    return out[:, :num_classes]


# ---------------------------------------------------------------------------
# ResNet50-v1.5 parameters (deterministic synthetic init, exact shapes)
# ---------------------------------------------------------------------------

class KeyGen:
    def __init__(self, key):
        self.key = key

    def __call__(self):
        self.key, sub = jax.random.split(self.key)
        return sub


def make_conv(kg, kh, kw, cin, cout):
    fan_in = kh * kw * cin
    w = jax.random.normal(kg(), (fan_in, cout), jnp.float32) * jnp.sqrt(2.0 / fan_in)
    return {'w': w.astype(jnp.bfloat16), 'kh': kh, 'kw': kw, 'cin': cin, 'cout': cout}


def make_bn(kg, c, eps=1e-5):
    gamma = 1.0 + 0.1 * jax.random.normal(kg(), (c,), jnp.float32)
    beta = 0.1 * jax.random.normal(kg(), (c,), jnp.float32)
    mean = 0.1 * jax.random.normal(kg(), (c,), jnp.float32)
    var = jnp.abs(1.0 + 0.1 * jax.random.normal(kg(), (c,), jnp.float32))
    scale = gamma / jnp.sqrt(var + eps)
    bias = beta - mean * scale
    return {'scale': scale.reshape(1, c), 'bias': bias.reshape(1, c)}


def make_resnet50_params(seed=0, num_classes=13):
    kg = KeyGen(jax.random.PRNGKey(seed))
    params = {
        'conv1': make_conv(kg, 7, 7, 3, 64),
        'bn1': make_bn(kg, 64),
    }
    inplanes = 64
    layers = []
    for planes, blocks, stride in [(64, 3, 1), (128, 4, 2), (256, 6, 2), (512, 3, 2)]:
        layer = []
        for b in range(blocks):
            s = stride if b == 0 else 1
            blk = {'stride': s,
                   'conv1': make_conv(kg, 1, 1, inplanes, planes),
                   'bn1': make_bn(kg, planes),
                   'conv2': make_conv(kg, 3, 3, planes, planes),
                   'bn2': make_bn(kg, planes),
                   'conv3': make_conv(kg, 1, 1, planes, planes * 4),
                   'bn3': make_bn(kg, planes * 4)}
            if s != 1 or inplanes != planes * 4:
                blk['dconv'] = make_conv(kg, 1, 1, inplanes, planes * 4)
                blk['dbn'] = make_bn(kg, planes * 4)
            layer.append(blk)
            inplanes = planes * 4
        layers.append(layer)
    params['layers'] = layers

    # fc weights padded once (at construction) to a 128-lane-wide output; padded logits
    # get a huge negative bias so their softmax weight is exactly zero.
    ncp = _round_up(num_classes, 128)
    fc_w = jax.random.normal(kg(), (2048, num_classes), jnp.float32) * jnp.sqrt(1.0 / 2048)
    fc_b = 0.01 * jax.random.normal(kg(), (num_classes,), jnp.float32)
    params['fc_w'] = jnp.pad(fc_w, ((0, 0), (0, ncp - num_classes))).astype(jnp.bfloat16)
    params['fc_b'] = jnp.pad(fc_b.reshape(1, -1), ((0, 0), (0, ncp - num_classes)),
                             constant_values=-1e30)
    params['num_classes'] = num_classes
    return params


# ---------------------------------------------------------------------------
# Forward pass: softmax(resnet50(image), dim=1)
# ---------------------------------------------------------------------------

def bottleneck(x, p):
    if 'dconv' in p:
        identity = conv_bn(x, p['dconv'], p['dbn'], stride=p['stride'], relu=False)
    else:
        identity = x
    out = conv_bn(x, p['conv1'], p['bn1'], relu=True)
    out = conv_bn(out, p['conv2'], p['bn2'], stride=p['stride'], pad=1, relu=True)  # v1.5
    out = conv_bn(out, p['conv3'], p['bn3'], relu=True, residual=identity)
    return out


def image_classifier_forward(params, image_nchw):
    x = jnp.transpose(image_nchw, (0, 2, 3, 1)).astype(jnp.bfloat16)  # NCHW -> NHWC bf16
    x = conv_bn(x, params['conv1'], params['bn1'], stride=2, pad=3, relu=True)
    x = maxpool_3x3_s2_p1(x)
    for layer in params['layers']:
        for blk in layer:
            x = bottleneck(x, blk)
    return head_gap_fc_softmax(x, params['fc_w'], params['fc_b'],
                               params['num_classes'])   # (N, 13) probabilities


if __name__ == "__main__":
    # small-but-valid input for a ResNet50: batch=2, 3 channels, 64x64 spatial
    image = jax.random.normal(jax.random.PRNGKey(0), (2, 3, 64, 64), jnp.float32)
    params = make_resnet50_params(seed=0)

    probs = image_classifier_forward(params, image)
    probs = jax.block_until_ready(probs)

    assert probs.shape == (2, 13), probs.shape
    assert bool(jnp.all(jnp.isfinite(probs)))
    row_sums = jnp.sum(probs, axis=1)
    assert bool(jnp.allclose(row_sums, 1.0, atol=1e-3)), row_sums
    print("KERNEL_OK")
</pallas_src>

<mosaic_0001>
module attributes {stable_mosaic.version = 11 : i64} {
  func.func @_fused_mm_kernel(%arg0: i32, %arg1: i32, %arg2: memref<256x147xbf16, #tpu.memory_space<vmem>>, %arg3: memref<147x64xbf16, #tpu.memory_space<vmem>>, %arg4: memref<1x64xf32, #tpu.memory_space<vmem>>, %arg5: memref<1x64xf32, #tpu.memory_space<vmem>>, %arg6: memref<256x64xbf16, #tpu.memory_space<vmem>>) attributes {dimension_semantics = [#tpu.dimension_semantics<parallel>, #tpu.dimension_semantics<parallel>], iteration_bounds = array<i64: 8, 1>, scalar_prefetch = 0 : i64, scratch_operands = 0 : i64, tpu.core_type = #tpu.core_type<tc>, window_params = [{transform_indices = @transform_0, window_bounds = array<i64: 256, 147>}, {transform_indices = @transform_1, window_bounds = array<i64: 147, 64>}, {transform_indices = @transform_2, window_bounds = array<i64: 1, 64>}, {transform_indices = @transform_3, window_bounds = array<i64: 1, 64>}, {transform_indices = @transform_4, window_bounds = array<i64: 256, 64>}]} {
    %c0 = arith.constant 0 : index
    %c0_0 = arith.constant 0 : index
    %0 = vector.load %arg2[%c0, %c0_0] : memref<256x147xbf16, #tpu.memory_space<vmem>>, vector<256x147xbf16>
    %c0_1 = arith.constant 0 : index
    %c0_2 = arith.constant 0 : index
    %1 = vector.load %arg3[%c0_1, %c0_2] : memref<147x64xbf16, #tpu.memory_space<vmem>>, vector<147x64xbf16>
    %cst = arith.constant dense<0.000000e+00> : vector<256x64xf32>
    %2 = tpu.matmul %0, %1, %cst {dimension_numbers = #tpu.dot_dimension_numbers<[1], [0], [0], [1], [0, 0, 1, 1], [], []>} : vector<256x147xbf16>, vector<147x64xbf16>, vector<256x64xf32> -> vector<256x64xf32>
    %c0_3 = arith.constant 0 : index
    %c0_4 = arith.constant 0 : index
    %3 = vector.load %arg4[%c0_3, %c0_4] : memref<1x64xf32, #tpu.memory_space<vmem>>, vector<1x64xf32>
    %4 = vector.broadcast %3 : vector<1x64xf32> to vector<256x64xf32>
    %5 = arith.mulf %2, %4 : vector<256x64xf32>
    %c0_5 = arith.constant 0 : index
    %c0_6 = arith.constant 0 : index
    %6 = vector.load %arg5[%c0_5, %c0_6] : memref<1x64xf32, #tpu.memory_space<vmem>>, vector<1x64xf32>
    %7 = vector.broadcast %6 : vector<1x64xf32> to vector<256x64xf32>
    %8 = arith.addf %5, %7 : vector<256x64xf32>
    %cst_7 = arith.constant 0.000000e+00 : f32
    %9 = vector.broadcast %cst_7 : f32 to vector<256x64xf32>
    %10 = arith.maximumf %8, %9 : vector<256x64xf32>
    %11 = arith.truncf %10 : vector<256x64xf32> to vector<256x64xbf16>
    %c0_8 = arith.constant 0 : index
    %c0_9 = arith.constant 0 : index
    %12 = vector.load %arg6[%c0_8, %c0_9] : memref<256x64xbf16, #tpu.memory_space<vmem>>, vector<256x64xbf16>
    tpu.vector_store %arg6[%c0_8, %c0_9], %11 {strides = array<i32>} : memref<256x64xbf16, #tpu.memory_space<vmem>>, vector<256x64xbf16>,
    return
  }
  func.func @transform_0(%arg0: i32, %arg1: i32) -> (i32, i32) {
    %c0_i32 = arith.constant 0 : i32
    %c0_i32_0 = arith.constant 0 : i32
    return %arg0, %c0_i32 : i32, i32
  }
  func.func @transform_1(%arg0: i32, %arg1: i32) -> (i32, i32) {
    %c0_i32 = arith.constant 0 : i32
    %c0_i32_0 = arith.constant 0 : i32
    return %c0_i32, %arg1 : i32, i32
  }
  func.func @transform_2(%arg0: i32, %arg1: i32) -> (i32, i32) {
    %c0_i32 = arith.constant 0 : i32
    %c0_i32_0 = arith.constant 0 : i32
    return %c0_i32, %arg1 : i32, i32
  }
  func.func @transform_3(%arg0: i32, %arg1: i32) -> (i32, i32) {
    %c0_i32 = arith.constant 0 : i32
    %c0_i32_0 = arith.constant 0 : i32
    return %c0_i32, %arg1 : i32, i32
  }
  func.func @transform_4(%arg0: i32, %arg1: i32) -> (i32, i32) {
    %c0_i32 = arith.constant 0 : i32
    return %arg0, %arg1 : i32, i32
  }
}

</mosaic_0001>

<bundles_post_ra>
// kernel: tpu_custom_call.1
= control target key start
LH: loop header
LB: loop body
LE: loop exit
PB: predicated region body
PF: predicated region fallthrough
CT: control target
= control target key end

     0   :  { %s1363_s15 = smov 0   ;;  %s1365_s16 = smov 0   ;;  %s1658_s0 = inlined_call_operand.vmem [shape: bf16[2048,147], index: 0, kind: input, shape index: {}]   ;;  %s1659_s1 = inlined_call_operand.vmem [shape: bf16[147,64], index: 1, kind: input, shape index: {}]   ;;  %s1660_s2 = inlined_call_operand.vmem [shape: f32[1,64], index: 2, kind: input, shape index: {}]   ;;  %s1661_s3 = inlined_call_operand.vmem [shape: f32[1,64], index: 3, kind: input, shape index: {}]   ;;  %s1662_s4 = inlined_call_operand.vmem [shape: bf16[2048,64], index: 4, kind: output, shape index: {}]  }
   0x1   :  { %s1367_s17 = smov 0  }
   0x2 LB: > { %s26_s18 = sadd.s32 1, %s1331_s16  ;;  %p1046_p0 = scmp.ge.s32.totalorder %s1335_s17, 1  ;;  %s1335_s17 = sphi %s1367_s17, %s14_s17   ;;  %s1331_s16 = sphi %s1365_s16, %s1664_s16   ;;  %s1327_s15 = sphi %s1363_s15, %s1663_s15  }
   0x3   : > { %p28_p1 = scmp.ge.s32.totalorder %s26_s18, 8  ;;  %p203_p2 = scmp.lt.s32.totalorder %s1335_s17, 9 }
   0x5   : > { %s1666_s18 = smov (%p28_p1, %s26_s18), 0  ;;  %p204_p3 = pnand %p1046_p0, %p203_p2 }
   0x6   : > { %s1047_s23 = sshll.u32 (!%p204_p3), %s1327_s15, 5 }
   0x7   : > { %207 = sbr.rel (%p204_p3) target bundleno = 307 (0x133), region = 36  ;;  %p244_p4 = scmp.lt.s32.totalorder (!%p204_p3), %s1047_s23, 255 }
   0xc   : > { %v1274_v0 = vld [vmem:[%s1659_s1 + $0x38] sm:$0xff]  ;;  %v320_v1 = vld [vmem:[%s1659_s1 + $0x48] sm:$0x3]  ;;  %vm571_vm0 = vcmask 1040384   ;;  %vm572_vm1 = vcmask 1041408   ;;  %v1273_v3 = vld [vmem:[%s1659_s1 + $0x30] sm:$0xff] }
   0xd   : > { %v502_v2 = vunpack.c.l.b16 %v320_v1  ;;  %578 = vmatpush.bf16.msra.mxu0 %v1274_v0  ;;  %1276 = vmatpush.bf16.msra.mxu2 %v1274_v0  ;;  %v1337_v4 = vmov 65535   ;;  %s1668_s23 = smov (!%p244_p4, %s1047_s23), 255  ;;  %v1272_v9 = vld [vmem:[%s1659_s1 + $0x28] sm:$0xff]  ;;  %v1275_v10 = vld [vmem:[%s1659_s1 + $0x40] sm:$0xff]  ;;  %vm522_vm2 = vcmask 154624   ;;  %v1270_v18 = vld [vmem:[%s1659_s1 + $0x18] sm:$0xff] }
   0xe   : > { %v573_v5 = vsel %vm571_vm0, 4294967295, %v1337_v4  ;;  %s1234_s28 = sshll.u32 %s1668_s23, 3  ;;  %v1271_v14 = vld [vmem:[%s1659_s1 + $0x20] sm:$0xff]  ;;  %v1269_v19 = vld [vmem:[%s1659_s1 + $0x10] sm:$0xff]  ;;  %v1268_v20 = vld [vmem:[%s1659_s1 + $0x8] sm:$0xff]  ;;  %s1051_s26 = sshll.u32 %s1668_s23, 2 }
   0xf   : > { %v512_v6 = vpack.c.b16 %v502_v2, %v502_v2  ;;  %v574_v7 = vsel %vm572_vm1, %v573_v5, 0  ;;  %s1402_s7 = scalar_lea.vmem %s1658_s0, %s1234_s28  ;;  %v1267_v26 = vld [vmem:[%s1659_s1] sm:$0xff]  ;;  %s1517_s29 = scalar_lea.vmem %s1662_s4, %s1051_s26  ;;  %vm892_vm3 = vcmask 519168  }
  0x10   : > { %v1235_v11 = vld [vmem:[%s1402_s7 + $0x4] sm:$0xf]  ;;  %v1056_v12 = vld [vmem:[%s1402_s7 + $0x8] sm:$0xf0]  ;;  %v1253_v15 = vld [vmem:[%s1402_s7 + $0x94] sm:$0xf] }
  0x11   : > { %v576_v8 = vand.u32 %v574_v7, %v512_v6  ;;  %579 = vmatpush.bf16.msra.mxu0 %v1273_v3  ;;  %1277 = vmatpush.bf16.msra.mxu2 %v1273_v3  ;;  %v1059_v13 = vor.u32 %v1235_v11, %v1056_v12  ;;  %v1128_v16 = vld [vmem:[%s1402_s7 + $0x98] sm:$0xf0]  ;;  %v1237_v21 = vld [vmem:[%s1402_s7 + $0x14] sm:$0xf]  ;;  %v1255_v23 = vld [vmem:[%s1402_s7 + $0xa4] sm:$0xf] }
  0x12   : > { %v1131_v17 = vor.u32 %v1253_v15, %v1128_v16  ;;  %v1064_v22 = vld [vmem:[%s1402_s7 + $0x18] sm:$0xf0]  ;;  %v1136_v24 = vld [vmem:[%s1402_s7 + $0xa8] sm:$0xf0]  ;;  %v1054_v27 = vld [vmem:[%s1402_s7] sm:$0xf] }
  0x13   : > { %673 = vmatpush.bf16.msra.mxu1 %v576_v8  ;;  %1284 = vmatpush.bf16.msra.mxu3 %v576_v8  ;;  %v1067_v25 = vor.u32 %v1237_v21, %v1064_v22  ;;  %v1236_v28 = vld [vmem:[%s1402_s7 + $0x4] sm:$0xf0]  ;;  %v1118_v29 = vld [vmem:[%s1402_s7 + $0x80] sm:$0xf]  ;;  %v1139_v31 = vor.u32 %v1255_v23, %v1136_v24  ;;  %v1239_v34 = vld [vmem:[%s1402_s7 + $0x24] sm:$0xf] }
  0x14   : > { %v1252_v30 = vld [vmem:[%s1402_s7 + $0x84] sm:$0xf0]  ;;  %v1055_v32 = vor.u32 %v1236_v28, %v1054_v27  ;;  %v1072_v35 = vld [vmem:[%s1402_s7 + $0x28] sm:$0xf0]  ;;  %v1257_v36 = vld [vmem:[%s1402_s7 + $0xb4] sm:$0xf] }
  0x15   : > { %580 = vmatpush.bf16.msra.mxu0 %v1272_v9  ;;  %1278 = vmatpush.bf16.msra.mxu2 %v1272_v9  ;;  %v1119_v33 = vor.u32 %v1252_v30, %v1118_v29  ;;  %v1144_v37 = vld [vmem:[%s1402_s7 + $0xb8] sm:$0xf0]  ;;  %v1075_v38 = vor.u32 %v1239_v34, %v1072_v35  ;;  %v1062_v39 = vld [vmem:[%s1402_s7 + $0x10] sm:$0xf]  ;;  %v1238_v40 = vld [vmem:[%s1402_s7 + $0x14] sm:$0xf0] }
  0x16   : > { %v1126_v41 = vld [vmem:[%s1402_s7 + $0x90] sm:$0xf]  ;;  %v1254_v42 = vld [vmem:[%s1402_s7 + $0x94] sm:$0xf0]  ;;  %v1147_v43 = vor.u32 %v1257_v36, %v1144_v37  ;;  %v1063_v44 = vor.u32 %v1238_v40, %v1062_v39  ;;  %v1241_v46 = vld [vmem:[%s1402_s7 + $0x34] sm:$0xf] }
  0x17   : > { %674 = vmatpush.bf16.msra.mxu1 %v1275_v10  ;;  %1285 = vmatpush.bf16.msra.mxu3 %v1275_v10  ;;  %v1127_v45 = vor.u32 %v1254_v42, %v1126_v41  ;;  %v1080_v47 = vld [vmem:[%s1402_s7 + $0x38] sm:$0xf0]  ;;  %v1259_v48 = vld [vmem:[%s1402_s7 + $0xc4] sm:$0xf]  ;;  %v1152_v49 = vld [vmem:[%s1402_s7 + $0xc8] sm:$0xf0] }
  0x18   : > { %v1083_v50 = vor.u32 %v1241_v46, %v1080_v47  ;;  %v1070_v51 = vld [vmem:[%s1402_s7 + $0x20] sm:$0xf]  ;;  %v1240_v52 = vld [vmem:[%s1402_s7 + $0x24] sm:$0xf0]  ;;  %v1155_v55 = vor.u32 %v1259_v48, %v1152_v49  ;;  %v1243_v58 = vld [vmem:[%s1402_s7 + $0x44] sm:$0xf] }
  0x19   : > { %581 = vmatpush.bf16.msra.mxu0 %v1271_v14  ;;  %1279 = vmatpush.bf16.msra.mxu2 %v1271_v14  ;;  %v1134_v53 = vld [vmem:[%s1402_s7 + $0xa0] sm:$0xf]  ;;  %v1256_v54 = vld [vmem:[%s1402_s7 + $0xa4] sm:$0xf0]  ;;  %v1071_v56 = vor.u32 %v1240_v52, %v1070_v51  ;;  %v1088_v59 = vld [vmem:[%s1402_s7 + $0x48] sm:$0xf0] }
  0x1a   : > { %1216 = vmatmul.msk.bf16.vlgmr.msra.gmra.mxu1 %vm522_vm2, %v1059_v13  ;;  %1225 = vmatmul.msk.bf16.vlgmr.msra.gmra.mxu3 %vm522_vm2, %v1131_v17  ;;  %v1135_v57 = vor.u32 %v1256_v54, %v1134_v53  ;;  %v1261_v60 = vld [vmem:[%s1402_s7 + $0xd4] sm:$0xf]  ;;  %v1160_v61 = vld [vmem:[%s1402_s7 + $0xd8] sm:$0xf0]  ;;  %v1091_v62 = vor.u32 %v1243_v58, %v1088_v59  ;;  %v1078_v63 = vld [vmem:[%s1402_s7 + $0x30] sm:$0xf] }
  0x1b   : > { %v1242_v0 = vld [vmem:[%s1402_s7 + $0x34] sm:$0xf0]  ;;  %v1142_v1 = vld [vmem:[%s1402_s7 + $0xb0] sm:$0xf]  ;;  %v1163_v3 = vor.u32 %v1261_v60, %v1160_v61  ;;  %v1245_v6 = vld [vmem:[%s1402_s7 + $0x54] sm:$0xf] }
  0x1c   : > { %v1258_v2 = vld [vmem:[%s1402_s7 + $0xb4] sm:$0xf0]  ;;  %v1079_v4 = vor.u32 %v1242_v0, %v1078_v63  ;;  %v1096_v7 = vld [vmem:[%s1402_s7 + $0x58] sm:$0xf0]  ;;  %v1263_v8 = vld [vmem:[%s1402_s7 + $0xe4] sm:$0xf] }
  0x1d   : > { %582 = vmatpush.bf16.msra.mxu0 %v1270_v18  ;;  %1280 = vmatpush.bf16.msra.mxu2 %v1270_v18  ;;  %v1143_v5 = vor.u32 %v1258_v2, %v1142_v1  ;;  %v1168_v9 = vld [vmem:[%s1402_s7 + $0xe8] sm:$0xf0]  ;;  %v1099_v10 = vor.u32 %v1245_v6, %v1096_v7  ;;  %v1086_v11 = vld [vmem:[%s1402_s7 + $0x40] sm:$0xf]  ;;  %v1244_v12 = vld [vmem:[%s1402_s7 + $0x44] sm:$0xf0] }
  0x1e   : > { %v1150_v13 = vld [vmem:[%s1402_s7 + $0xc0] sm:$0xf]  ;;  %v1260_v14 = vld [vmem:[%s1402_s7 + $0xc4] sm:$0xf0]  ;;  %v1171_v15 = vor.u32 %v1263_v8, %v1168_v9  ;;  %v1087_v16 = vor.u32 %v1244_v12, %v1086_v11  ;;  %v1247_v18 = vld [vmem:[%s1402_s7 + $0x64] sm:$0xf] }
  0x1f   : > { %v1151_v17 = vor.u32 %v1260_v14, %v1150_v13  ;;  %v1176_v21 = vld [vmem:[%s1402_s7 + $0xf8] sm:$0xf0]  ;;  %v1094_v23 = vld [vmem:[%s1402_s7 + $0x50] sm:$0xf]  ;;  %v1246_v24 = vld [vmem:[%s1402_s7 + $0x54] sm:$0xf0] }
  0x20   : > { %v1095_v28 = vor.u32 %v1246_v24, %v1094_v23  ;;  %v1249_v30 = vld [vmem:[%s1402_s7 + $0x74] sm:$0xf]  ;;  %v1248_v34 = vld [vmem:[%s1402_s7 + $0x64] sm:$0xf0]  ;;  %v1166_v35 = vld [vmem:[%s1402_s7 + $0xe0] sm:$0xf] }
  0x21   : > { %583 = vmatpush.bf16.msra.mxu0 %v1269_v19  ;;  %1281 = vmatpush.bf16.msra.mxu2 %v1269_v19  ;;  %v1104_v19 = vld [vmem:[%s1402_s7 + $0x68] sm:$0xf0]  ;;  %v1264_v36 = vld [vmem:[%s1402_s7 + $0xe4] sm:$0xf0]  ;;  %v1251_v39 = vld [vmem:[%s1402_s7 + $0x84] sm:$0xf] }
  0x22   : > { %v1107_v22 = vor.u32 %v1247_v18, %v1104_v19  ;;  %v1120_v40 = vld [vmem:[%s1402_s7 + $0x88] sm:$0xf0]  ;;  %v1110_v42 = vld [vmem:[%s1402_s7 + $0x70] sm:$0xf]  ;;  %v1266_v46 = vld [vmem:[%s1402_s7 + $0xf4] sm:$0xf0] }
  0x23   : > { %v1123_v41 = vor.u32 %v1251_v39, %v1120_v40  ;;  %v1502_v52 = vld [vmem:[%s1660_s2] ss:$0 sm:$0xff] }
  0x25   : > { %584 = vmatpush.bf16.msra.mxu0 %v1268_v20  ;;  %1282 = vmatpush.bf16.msra.mxu2 %v1268_v20  ;;  %v1265_v20 = vld [vmem:[%s1402_s7 + $0xf4] sm:$0xf] }
  0x26   : > { %v1179_v27 = vor.u32 %v1265_v20, %v1176_v21 }
  0x29   : > { %585 = vmatpush.bf16.msra.mxu0 %v1267_v26  ;;  %1283 = vmatpush.bf16.msra.mxu2 %v1267_v26  ;;  %v1262_v26 = vld [vmem:[%s1402_s7 + $0xd4] sm:$0xf0] }
  0x2a   : > { %1217 = vmatmul.msk.bf16.gmra.mxu1 %vm522_vm2, %v1067_v25  ;;  %1226 = vmatmul.msk.bf16.gmra.mxu3 %vm522_vm2, %v1139_v31  ;;  %v1158_v25 = vld [vmem:[%s1402_s7 + $0xd0] sm:$0xf]  ;;  %v1112_v31 = vld [vmem:[%s1402_s7 + $0x78] sm:$0xf0] }
  0x2b   : > { %v1159_v29 = vor.u32 %v1262_v26, %v1158_v25 }
  0x2c   : > { %586 = vmatmul.bf16.vlgmr.msra.gmra.mxu0 %v1055_v32  ;;  %626 = vmatmul.bf16.vlgmr.msra.gmra.mxu2 %v1119_v33  ;;  %v1115_v32 = vor.u32 %v1249_v30, %v1112_v31  ;;  %v1102_v33 = vld [vmem:[%s1402_s7 + $0x60] sm:$0xf] }
  0x2d   : > { %v1103_v37 = vor.u32 %v1248_v34, %v1102_v33 }
  0x3a   : > { %1218 = vmatmul.msk.bf16.gmra.mxu1 %vm522_vm2, %v1075_v38  ;;  %1227 = vmatmul.msk.bf16.gmra.mxu3 %vm522_vm2, %v1147_v43  ;;  %v1167_v38 = vor.u32 %v1264_v36, %v1166_v35  ;;  %v1250_v43 = vld [vmem:[%s1402_s7 + $0x74] sm:$0xf0] }
  0x3b   : > { %v1111_v47 = vor.u32 %v1250_v43, %v1110_v42 }
  0x3c   : > { %591 = vmatmul.bf16.gmra.mxu0 %v1063_v44  ;;  %631 = vmatmul.bf16.gmra.mxu2 %v1127_v45  ;;  %v1174_v45 = vld [vmem:[%s1402_s7 + $0xf0] sm:$0xf] }
  0x3d   : > { %v1175_v48 = vor.u32 %v1266_v46, %v1174_v45 }
  0x4a   : > { %1219 = vmatmul.msk.bf16.gmra.mxu1 %vm522_vm2, %v1083_v50  ;;  %1228 = vmatmul.msk.bf16.gmra.mxu3 %vm522_vm2, %v1155_v55  ;;  %v1507_v55 = vld [vmem:[%s1661_s3] ss:$0 sm:$0xff] }
  0x4c   : > { %596 = vmatmul.bf16.gmra.mxu0 %v1071_v56  ;;  %636 = vmatmul.bf16.gmra.mxu2 %v1135_v57 }
  0x5a   : > { %1220 = vmatmul.msk.bf16.gmra.mxu1 %vm522_vm2, %v1091_v62  ;;  %1229 = vmatmul.msk.bf16.gmra.mxu3 %vm522_vm2, %v1163_v3 }
  0x5c   : > { %601 = vmatmul.bf16.gmra.mxu0 %v1079_v4  ;;  %641 = vmatmul.bf16.gmra.mxu2 %v1143_v5 }
  0x6a   : > { %1221 = vmatmul.msk.bf16.gmra.mxu1 %vm522_vm2, %v1099_v10  ;;  %1230 = vmatmul.msk.bf16.gmra.mxu3 %vm522_vm2, %v1171_v15 }
  0x6c   : > { %606 = vmatmul.bf16.gmra.mxu0 %v1087_v16  ;;  %646 = vmatmul.bf16.gmra.mxu2 %v1151_v17 }
  0x7a   : > { %1222 = vmatmul.msk.bf16.gmra.mxu1 %vm522_vm2, %v1107_v22  ;;  %1231 = vmatmul.msk.bf16.gmra.mxu3 %vm522_vm2, %v1179_v27 }
  0x7c   : > { %611 = vmatmul.bf16.gmra.mxu0 %v1095_v28  ;;  %651 = vmatmul.bf16.gmra.mxu2 %v1159_v29 }
  0x8a   : > { %1223 = vmatmul.msk.bf16.gmra.mxu1 %vm522_vm2, %v1115_v32 }
  0x8c   : > { %616 = vmatmul.bf16.gmra.mxu0 %v1103_v37  ;;  %656 = vmatmul.bf16.gmra.mxu2 %v1167_v38 }
  0x97   : > { %v676_v44 = vpop.f32.mrf.mxu1 }
  0x9a   : > { %1224 = vmatmul.msk.bf16.gmra.mxu1 %vm522_vm2, %v1123_v41 }
  0x9c   : > { %621 = vmatmul.bf16.gmra.mxu0 %v1111_v47  ;;  %661 = vmatmul.bf16.gmra.mxu2 %v1175_v48 }
  0x9d   : > { %v721_v51 = vpop.f32.mrf.mxu3 }
  0x9f   : > { %v678_v49 = vpop.f32.mrf.mxu1 }
  0xa5   : > { %v723_v61 = vpop.f32.mrf.mxu3 }
  0xa7   : > { %v681_v50 = vpop.f32.mrf.mxu1 }
  0xa9   : > { %v587_v53 = vpop.f32.mrf.mxu0 }
  0xaa   : > { %v677_v54 = vadd.f32 %v676_v44, %v587_v53 }
  0xac   : > { %v760_v56 = vmul.f32 %v1502_v52, %v677_v54 }
  0xad   : > { %v726_v9 = vpop.f32.mrf.mxu3 }
  0xae   : > { %v796_v57 = vadd.f32 %v1507_v55, %v760_v56 }
  0xaf   : > { %v683_v58 = vpop.f32.mrf.mxu1  ;;  %v1512_v60 = vpop.f32.mrf.mxu2 }
  0xb0   : > { %v828_v59 = vmax.f32 %v796_v57, 0.0 }
  0xb1   : > { %v589_v62 = vpop.f32.mrf.mxu0 }
  0xb2   : > { %v860_v63 = vpack.c.bf16 %v828_v59, %v828_v59  ;;  %v679_v0 = vadd.f32 %v678_v49, %v589_v62 }
  0xb4   : > { %893 = vst.msk [vmem:[%s1517_s29] sm:$0xf] %vm892_vm3, %v860_v63  ;;  %v761_v1 = vmul.f32 %v1502_v52, %v679_v0 }
  0xb5   : > { %v728_v21 = vpop.f32.mrf.mxu3 }
  0xb6   : > { %v797_v2 = vadd.f32 %v1507_v55, %v761_v1 }
  0xb7   : > { %v686_v3 = vpop.f32.mrf.mxu1  ;;  %v1523_v5 = vpop.f32.mrf.mxu2 }
  0xb8   : > { %v829_v4 = vmax.f32 %v797_v2, 0.0 }
  0xb9   : > { %v592_v6 = vpop.f32.mrf.mxu0 }
  0xba   : > { %v861_v7 = vpack.c.bf16 %v829_v4, %v829_v4  ;;  %v682_v8 = vadd.f32 %v681_v50, %v592_v6 }
  0xbc   : > { %894 = vst.msk [vmem:[%s1517_s29 + $0x4] sm:$0xf] %vm892_vm3, %v861_v7  ;;  %v762_v10 = vmul.f32 %v1502_v52, %v682_v8 }
  0xbd   : > { %v731_v38 = vpop.f32.mrf.mxu3 }
  0xbe   : > { %v798_v11 = vadd.f32 %v1507_v55, %v762_v10 }
  0xbf   : > { %v688_v12 = vpop.f32.mrf.mxu1  ;;  %v632_v14 = vpop.f32.mrf.mxu2 }
  0xc0   : > { %v830_v13 = vmax.f32 %v798_v11, 0.0  ;;  %v722_v15 = vadd.f32 %v721_v51, %v632_v14 }
  0xc1   : > { %v594_v16 = vpop.f32.mrf.mxu0 }
  0xc2   : > { %v862_v17 = vpack.c.bf16 %v830_v13, %v830_v13  ;;  %v684_v18 = vadd.f32 %v683_v58, %v594_v16  ;;  %v778_v19 = vmul.f32 %v1502_v52, %v722_v15 }
  0xc4   : > { %895 = vst.msk [vmem:[%s1517_s29 + $0x8] sm:$0xf] %vm892_vm3, %v862_v17  ;;  %v763_v20 = vmul.f32 %v1502_v52, %v684_v18  ;;  %v814_v22 = vadd.f32 %v1507_v55, %v778_v19 }
  0xc5   : > { %v733_v57 = vpop.f32.mrf.mxu3 }
  0xc6   : > { %v799_v23 = vadd.f32 %v1507_v55, %v763_v20  ;;  %v846_v25 = vmax.f32 %v814_v22, 0.0 }
  0xc7   : > { %v691_v24 = vpop.f32.mrf.mxu1  ;;  %v634_v27 = vpop.f32.mrf.mxu2 }
  0xc8   : > { %v831_v26 = vmax.f32 %v799_v23, 0.0  ;;  %v878_v28 = vpack.c.bf16 %v846_v25, %v846_v25  ;;  %v724_v29 = vadd.f32 %v723_v61, %v634_v27 }
  0xc9   : > { %v597_v30 = vpop.f32.mrf.mxu0 }
  0xca   : > { %v863_v31 = vpack.c.bf16 %v831_v26, %v831_v26  ;;  %v687_v32 = vadd.f32 %v686_v3, %v597_v30  ;;  %911 = vst.msk [vmem:[%s1517_s29 + $0x48] sm:$0xf] %vm892_vm3, %v878_v28  ;;  %v779_v33 = vmul.f32 %v1502_v52, %v724_v29 }
  0xcc   : > { %896 = vst.msk [vmem:[%s1517_s29 + $0xc] sm:$0xf] %vm892_vm3, %v863_v31  ;;  %v764_v34 = vmul.f32 %v1502_v52, %v687_v32  ;;  %v815_v35 = vadd.f32 %v1507_v55, %v779_v33 }
  0xcd   : > { %v736_v14 = vpop.f32.mrf.mxu3 }
  0xce   : > { %v800_v36 = vadd.f32 %v1507_v55, %v764_v34  ;;  %v847_v39 = vmax.f32 %v815_v35, 0.0 }
  0xcf   : > { %v693_v37 = vpop.f32.mrf.mxu1  ;;  %v637_v41 = vpop.f32.mrf.mxu2 }
  0xd0   : > { %v832_v40 = vmax.f32 %v800_v36, 0.0  ;;  %v879_v42 = vpack.c.bf16 %v847_v39, %v847_v39  ;;  %v727_v43 = vadd.f32 %v726_v9, %v637_v41 }
  0xd1   : > { %v599_v44 = vpop.f32.mrf.mxu0 }
  0xd2   : > { %v864_v45 = vpack.c.bf16 %v832_v40, %v832_v40  ;;  %v689_v46 = vadd.f32 %v688_v12, %v599_v44  ;;  %912 = vst.msk [vmem:[%s1517_s29 + $0x4c] sm:$0xf] %vm892_vm3, %v879_v42  ;;  %v780_v47 = vmul.f32 %v1502_v52, %v727_v43 }
  0xd4   : > { %897 = vst.msk [vmem:[%s1517_s29 + $0x10] sm:$0xf] %vm892_vm3, %v864_v45  ;;  %v765_v48 = vmul.f32 %v1502_v52, %v689_v46  ;;  %v816_v49 = vadd.f32 %v1507_v55, %v780_v47 }
  0xd5   : > { %v738_v30 = vpop.f32.mrf.mxu3 }
  0xd6   : > { %v801_v50 = vadd.f32 %v1507_v55, %v765_v48  ;;  %v848_v53 = vmax.f32 %v816_v49, 0.0 }
  0xd7   : > { %v696_v51 = vpop.f32.mrf.mxu1  ;;  %v639_v56 = vpop.f32.mrf.mxu2 }
  0xd8   : > { %v833_v54 = vmax.f32 %v801_v50, 0.0  ;;  %v880_v58 = vpack.c.bf16 %v848_v53, %v848_v53  ;;  %v729_v59 = vadd.f32 %v728_v21, %v639_v56 }
  0xd9   : > { %v602_v61 = vpop.f32.mrf.mxu0 }
  0xda   : > { %v865_v62 = vpack.c.bf16 %v833_v54, %v833_v54  ;;  %v692_v63 = vadd.f32 %v691_v24, %v602_v61  ;;  %913 = vst.msk [vmem:[%s1517_s29 + $0x50] sm:$0xf] %vm892_vm3, %v880_v58  ;;  %v781_v0 = vmul.f32 %v1502_v52, %v729_v59 }
  0xdc   : > { %898 = vst.msk [vmem:[%s1517_s29 + $0x14] sm:$0xf] %vm892_vm3, %v865_v62  ;;  %v766_v1 = vmul.f32 %v1502_v52, %v692_v63  ;;  %v817_v2 = vadd.f32 %v1507_v55, %v781_v0 }
  0xdd   : > { %v741_v47 = vpop.f32.mrf.mxu3 }
  0xde   : > { %v802_v3 = vadd.f32 %v1507_v55, %v766_v1  ;;  %v849_v6 = vmax.f32 %v817_v2, 0.0 }
  0xdf   : > { %v698_v4 = vpop.f32.mrf.mxu1  ;;  %v642_v8 = vpop.f32.mrf.mxu2 }
  0xe0   : > { %v834_v7 = vmax.f32 %v802_v3, 0.0  ;;  %v881_v9 = vpack.c.bf16 %v849_v6, %v849_v6  ;;  %v732_v10 = vadd.f32 %v731_v38, %v642_v8 }
  0xe1   : > { %v604_v11 = vpop.f32.mrf.mxu0 }
  0xe2   : > { %v866_v12 = vpack.c.bf16 %v834_v7, %v834_v7  ;;  %v694_v13 = vadd.f32 %v693_v37, %v604_v11  ;;  %914 = vst.msk [vmem:[%s1517_s29 + $0x54] sm:$0xf] %vm892_vm3, %v881_v9  ;;  %v782_v15 = vmul.f32 %v1502_v52, %v732_v10 }
  0xe4   : > { %899 = vst.msk [vmem:[%s1517_s29 + $0x18] sm:$0xf] %vm892_vm3, %v866_v12  ;;  %v767_v16 = vmul.f32 %v1502_v52, %v694_v13  ;;  %v818_v17 = vadd.f32 %v1507_v55, %v782_v15 }
  0xe5   : > { %v743_v3 = vpop.f32.mrf.mxu3 }
  0xe6   : > { %v803_v18 = vadd.f32 %v1507_v55, %v767_v16  ;;  %v850_v20 = vmax.f32 %v818_v17, 0.0 }
  0xe7   : > { %v701_v19 = vpop.f32.mrf.mxu1  ;;  %v644_v22 = vpop.f32.mrf.mxu2 }
  0xe8   : > { %v835_v21 = vmax.f32 %v803_v18, 0.0  ;;  %v882_v23 = vpack.c.bf16 %v850_v20, %v850_v20  ;;  %v734_v24 = vadd.f32 %v733_v57, %v644_v22 }
  0xe9   : > { %v607_v25 = vpop.f32.mrf.mxu0 }
  0xea   : > { %v867_v26 = vpack.c.bf16 %v835_v21, %v835_v21  ;;  %v697_v27 = vadd.f32 %v696_v51, %v607_v25  ;;  %915 = vst.msk [vmem:[%s1517_s29 + $0x58] sm:$0xf] %vm892_vm3, %v882_v23  ;;  %v783_v28 = vmul.f32 %v1502_v52, %v734_v24 }
  0xec   : > { %900 = vst.msk [vmem:[%s1517_s29 + $0x1c] sm:$0xf] %vm892_vm3, %v867_v26  ;;  %v768_v29 = vmul.f32 %v1502_v52, %v697_v27  ;;  %v819_v31 = vadd.f32 %v1507_v55, %v783_v28 }
  0xed   : > { %v746_v22 = vpop.f32.mrf.mxu3 }
  0xee   : > { %v804_v32 = vadd.f32 %v1507_v55, %v768_v29  ;;  %v851_v34 = vmax.f32 %v819_v31, 0.0 }
  0xef   : > { %v703_v33 = vpop.f32.mrf.mxu1  ;;  %v647_v36 = vpop.f32.mrf.mxu2 }
  0xf0   : > { %v836_v35 = vmax.f32 %v804_v32, 0.0  ;;  %v883_v37 = vpack.c.bf16 %v851_v34, %v851_v34  ;;  %v737_v38 = vadd.f32 %v736_v14, %v647_v36 }
  0xf1   : > { %v609_v39 = vpop.f32.mrf.mxu0 }
  0xf2   : > { %v868_v40 = vpack.c.bf16 %v836_v35, %v836_v35  ;;  %v699_v41 = vadd.f32 %v698_v4, %v609_v39  ;;  %916 = vst.msk [vmem:[%s1517_s29 + $0x5c] sm:$0xf] %vm892_vm3, %v883_v37  ;;  %v784_v42 = vmul.f32 %v1502_v52, %v737_v38 }
  0xf4   : > { %901 = vst.msk [vmem:[%s1517_s29 + $0x20] sm:$0xf] %vm892_vm3, %v868_v40  ;;  %v769_v43 = vmul.f32 %v1502_v52, %v699_v41  ;;  %v820_v44 = vadd.f32 %v1507_v55, %v784_v42 }
  0xf5   : > { %v748_v38 = vpop.f32.mrf.mxu3 }
  0xf6   : > { %v805_v45 = vadd.f32 %v1507_v55, %v769_v43  ;;  %v852_v48 = vmax.f32 %v820_v44, 0.0 }
  0xf7   : > { %v706_v46 = vpop.f32.mrf.mxu1  ;;  %v649_v50 = vpop.f32.mrf.mxu2 }
  0xf8   : > { %v837_v49 = vmax.f32 %v805_v45, 0.0  ;;  %v884_v51 = vpack.c.bf16 %v852_v48, %v852_v48  ;;  %v739_v53 = vadd.f32 %v738_v30, %v649_v50 }
  0xf9   : > { %v612_v54 = vpop.f32.mrf.mxu0 }
  0xfa   : > { %v869_v56 = vpack.c.bf16 %v837_v49, %v837_v49  ;;  %v702_v57 = vadd.f32 %v701_v19, %v612_v54  ;;  %917 = vst.msk [vmem:[%s1517_s29 + $0x60] sm:$0xf] %vm892_vm3, %v884_v51  ;;  %v785_v58 = vmul.f32 %v1502_v52, %v739_v53 }
  0xfc   : > { %902 = vst.msk [vmem:[%s1517_s29 + $0x24] sm:$0xf] %vm892_vm3, %v869_v56  ;;  %v770_v59 = vmul.f32 %v1502_v52, %v702_v57  ;;  %v821_v61 = vadd.f32 %v1507_v55, %v785_v58 }
  0xfe   : > { %v806_v62 = vadd.f32 %v1507_v55, %v770_v59  ;;  %v853_v0 = vmax.f32 %v821_v61, 0.0  ;;  %v751_v59 = vpop.f32.mrf.mxu3 }
  0xff   : > { %v708_v63 = vpop.f32.mrf.mxu1  ;;  %v652_v2 = vpop.f32.mrf.mxu2 }
 0x100   : > { %v838_v1 = vmax.f32 %v806_v62, 0.0  ;;  %v885_v4 = vpack.c.bf16 %v853_v0, %v853_v0  ;;  %v742_v6 = vadd.f32 %v741_v47, %v652_v2 }
 0x101   : > { %v614_v7 = vpop.f32.mrf.mxu0 }
 0x102   : > { %v870_v8 = vpack.c.bf16 %v838_v1, %v838_v1  ;;  %v704_v9 = vadd.f32 %v703_v33, %v614_v7  ;;  %918 = vst.msk [vmem:[%s1517_s29 + $0x64] sm:$0xf] %vm892_vm3, %v885_v4  ;;  %v786_v10 = vmul.f32 %v1502_v52, %v742_v6 }
 0x104   : > { %903 = vst.msk [vmem:[%s1517_s29 + $0x28] sm:$0xf] %vm892_vm3, %v870_v8  ;;  %v771_v11 = vmul.f32 %v1502_v52, %v704_v9  ;;  %v822_v12 = vadd.f32 %v1507_v55, %v786_v10 }
 0x106   : > { %v807_v13 = vadd.f32 %v1507_v55, %v771_v11  ;;  %v854_v15 = vmax.f32 %v822_v12, 0.0 }
 0x107   : > { %v711_v14 = vpop.f32.mrf.mxu1  ;;  %v654_v17 = vpop.f32.mrf.mxu2 }
 0x108   : > { %v839_v16 = vmax.f32 %v807_v13, 0.0  ;;  %v886_v18 = vpack.c.bf16 %v854_v15, %v854_v15  ;;  %v744_v19 = vadd.f32 %v743_v3, %v654_v17 }
 0x109   : > { %v617_v20 = vpop.f32.mrf.mxu0 }
 0x10a   : > { %v871_v21 = vpack.c.bf16 %v839_v16, %v839_v16  ;;  %v707_v23 = vadd.f32 %v706_v46, %v617_v20  ;;  %919 = vst.msk [vmem:[%s1517_s29 + $0x68] sm:$0xf] %vm892_vm3, %v886_v18  ;;  %v787_v24 = vmul.f32 %v1502_v52, %v744_v19  ;;  %v753_v18 = vpop.f32.mrf.mxu3 }
 0x10c   : > { %904 = vst.msk [vmem:[%s1517_s29 + $0x2c] sm:$0xf] %vm892_vm3, %v871_v21  ;;  %v772_v25 = vmul.f32 %v1502_v52, %v707_v23  ;;  %v823_v26 = vadd.f32 %v1507_v55, %v787_v24 }
 0x10e   : > { %v808_v27 = vadd.f32 %v1507_v55, %v772_v25  ;;  %v855_v29 = vmax.f32 %v823_v26, 0.0 }
 0x10f   : > { %v713_v28 = vpop.f32.mrf.mxu1  ;;  %v657_v31 = vpop.f32.mrf.mxu2 }
 0x110   : > { %v840_v30 = vmax.f32 %v808_v27, 0.0  ;;  %v887_v32 = vpack.c.bf16 %v855_v29, %v855_v29  ;;  %v747_v33 = vadd.f32 %v746_v22, %v657_v31 }
 0x111   : > { %v619_v34 = vpop.f32.mrf.mxu0 }
 0x112   : > { %v872_v35 = vpack.c.bf16 %v840_v30, %v840_v30  ;;  %v709_v36 = vadd.f32 %v708_v63, %v619_v34  ;;  %920 = vst.msk [vmem:[%s1517_s29 + $0x6c] sm:$0xf] %vm892_vm3, %v887_v32  ;;  %v788_v37 = vmul.f32 %v1502_v52, %v747_v33 }
 0x114   : > { %905 = vst.msk [vmem:[%s1517_s29 + $0x30] sm:$0xf] %vm892_vm3, %v872_v35  ;;  %v773_v39 = vmul.f32 %v1502_v52, %v709_v36  ;;  %v824_v40 = vadd.f32 %v1507_v55, %v788_v37 }
 0x116   : > { %v809_v41 = vadd.f32 %v1507_v55, %v773_v39  ;;  %v856_v43 = vmax.f32 %v824_v40, 0.0 }
 0x117   : > { %v716_v42 = vpop.f32.mrf.mxu1  ;;  %v659_v46 = vpop.f32.mrf.mxu2 }
 0x118   : > { %v717_v44 = vadd.f32 %v716_v42, %v1512_v60  ;;  %v841_v45 = vmax.f32 %v809_v41, 0.0  ;;  %v888_v47 = vpack.c.bf16 %v856_v43, %v856_v43  ;;  %v749_v49 = vadd.f32 %v748_v38, %v659_v46 }
 0x119   : > { %v622_v50 = vpop.f32.mrf.mxu0 }
 0x11a   : > { %v776_v48 = vmul.f32 %v1502_v52, %v717_v44  ;;  %v873_v51 = vpack.c.bf16 %v841_v45, %v841_v45  ;;  %v712_v53 = vadd.f32 %v711_v14, %v622_v50  ;;  %921 = vst.msk [vmem:[%s1517_s29 + $0x70] sm:$0xf] %vm892_vm3, %v888_v47  ;;  %v789_v56 = vmul.f32 %v1502_v52, %v749_v49 }
 0x11c   : > { %v812_v54 = vadd.f32 %v1507_v55, %v776_v48  ;;  %906 = vst.msk [vmem:[%s1517_s29 + $0x34] sm:$0xf] %vm892_vm3, %v873_v51  ;;  %v774_v60 = vmul.f32 %v1502_v52, %v712_v53  ;;  %v825_v58 = vadd.f32 %v1507_v55, %v789_v56 }
 0x11e   : > { %v844_v57 = vmax.f32 %v812_v54, 0.0  ;;  %v810_v61 = vadd.f32 %v1507_v55, %v774_v60  ;;  %v857_v0 = vmax.f32 %v825_v58, 0.0 }
 0x11f   : > { %v718_v62 = vpop.f32.mrf.mxu1  ;;  %v662_v3 = vpop.f32.mrf.mxu2 }
 0x120   : > { %v876_v63 = vpack.c.bf16 %v844_v57, %v844_v57  ;;  %v719_v1 = vadd.f32 %v718_v62, %v1523_v5  ;;  %v842_v2 = vmax.f32 %v810_v61, 0.0  ;;  %v889_v4 = vpack.c.bf16 %v857_v0, %v857_v0 }
 0x121   : > { %v752_v7 = vadd.f32 %v751_v59, %v662_v3  ;;  %v624_v8 = vpop.f32.mrf.mxu0 }
 0x122   : > { %909 = vst.msk [vmem:[%s1517_s29 + $0x40] sm:$0xf] %vm892_vm3, %v876_v63  ;;  %v777_v6 = vmul.f32 %v1502_v52, %v719_v1  ;;  %v874_v9 = vpack.c.bf16 %v842_v2, %v842_v2  ;;  %v714_v10 = vadd.f32 %v713_v28, %v624_v8 }
 0x123   : > { %922 = vst.msk [vmem:[%s1517_s29 + $0x74] sm:$0xf] %vm892_vm3, %v889_v4  ;;  %v790_v12 = vmul.f32 %v1502_v52, %v752_v7 }
 0x124   : > { %v813_v11 = vadd.f32 %v1507_v55, %v777_v6  ;;  %907 = vst.msk [vmem:[%s1517_s29 + $0x38] sm:$0xf] %vm892_vm3, %v874_v9  ;;  %v775_v5 = vmul.f32 %v1502_v52, %v714_v10 }
 0x125   : > { %v826_v14 = vadd.f32 %v1507_v55, %v790_v12 }
 0x126   : > { %v845_v13 = vmax.f32 %v813_v11, 0.0  ;;  %v811_v15 = vadd.f32 %v1507_v55, %v775_v5 }
 0x127   : > { %v858_v17 = vmax.f32 %v826_v14, 0.0  ;;  %v664_v20 = vpop.f32.mrf.mxu2 }
 0x128   : > { %v877_v16 = vpack.c.bf16 %v845_v13, %v845_v13  ;;  %v843_v19 = vmax.f32 %v811_v15, 0.0  ;;  %v754_v22 = vadd.f32 %v753_v18, %v664_v20 }
 0x129   : > { %v890_v21 = vpack.c.bf16 %v858_v17, %v858_v17 }
 0x12a   : > { %910 = vst.msk [vmem:[%s1517_s29 + $0x44] sm:$0xf] %vm892_vm3, %v877_v16  ;;  %v875_v23 = vpack.c.bf16 %v843_v19, %v843_v19  ;;  %v791_v24 = vmul.f32 %v1502_v52, %v754_v22 }
 0x12b   : > { %923 = vst.msk [vmem:[%s1517_s29 + $0x78] sm:$0xf] %vm892_vm3, %v890_v21 }
 0x12c   : > { %908 = vst.msk [vmem:[%s1517_s29 + $0x3c] sm:$0xf] %vm892_vm3, %v875_v23  ;;  %v827_v25 = vadd.f32 %v1507_v55, %v791_v24 }
 0x12e   : > { %v859_v26 = vmax.f32 %v827_v25, 0.0 }
 0x130   : > { %v891_v27 = vpack.c.bf16 %v859_v26, %v859_v26 }
 0x132   : > { %924 = vst.msk [vmem:[%s1517_s29 + $0x7c] sm:$0xf] %vm892_vm3, %v891_v27 }
 0x133 PF: > { %s14_s17 = sadd.s32 1, %s1335_s17   ;;  %s1663_s15 = smov %s1331_s16 }
 0x134   : > { %p11_p5 = scmp.ge.s32.totalorder %s14_s17, 10   ;;  %s1664_s16 = smov %s1666_s18 }
 0x136   :  { %13 = sbr.rel (!%p11_p5) target bundleno = 2 (0x2), region = 75 }

</bundles_post_ra>
